<compile_context>
chip_gen: v5e
topology: v5e:2x2
jax: 0.10.0
libtpu: 0.0.40
codegen_flags: <defaults>
</compile_context>

<pallas_src>
import functools
import numpy as np

import jax
import jax.numpy as jnp
from jax.experimental import pallas as pl
from jax.experimental.pallas import tpu as pltpu


def _round_up(x, m):
    return ((x + m - 1) // m) * m


def _net_kernel(x_ref, w1_ref, w2_ref, w3_ref, b_ref, bnd_ref, o_ref,
                *, h1, h2, d_out, has_inf):
    # x_ref:  (tile_b, d_in)  f32  (batch-major, cast to bf16 in-kernel)
    # w*_ref: PyTorch layout (out_features, in_features), bf16
    # b_ref:  (h1+h2+d_out, 1) f32, packed biases (feature-major columns)
    # bnd_ref:(d_out, 2) f32, column 0 = lo, column 1 = hi
    # o_ref:  (d_out, tile_b) f32, feature-major (lane-dense) output
    x_bf = x_ref[...].astype(jnp.bfloat16)

    # First layer: contract W1's in_features with x's feature dim directly
    # (rhs-transposed contraction) -> feature-major (h1, tile_b) without ever
    # materializing x^T.
    dn = (((1,), (1,)), ((), ()))
    h = jax.lax.dot_general(w1_ref[...], x_bf, dn,
                            preferred_element_type=jnp.float32)
    h = jnp.maximum(h + b_ref[0:h1, :], 0.0)                     # ReLU
    h = jnp.dot(w2_ref[...], h.astype(jnp.bfloat16),
                preferred_element_type=jnp.float32)
    h = jnp.maximum(h + b_ref[h1:h1 + h2, :], 0.0)
    y = jnp.dot(w3_ref[...], h.astype(jnp.bfloat16),
                preferred_element_type=jnp.float32)
    y = y + b_ref[h1 + h2:h1 + h2 + d_out, :]

    bnd = bnd_ref[...]
    lo = bnd[:, 0:1]                                             # (d_out, 1)
    hi = bnd[:, 1:2]
    if has_inf:
        # torch.maximum / torch.minimum clamp path
        y = jnp.minimum(jnp.maximum(y, lo), hi)
    else:
        # sigmoid rescaling; exp and divide both run on the EUP slot
        y = (hi - lo) * pl.reciprocal(1.0 + jnp.exp(-y), approx=True) + lo
    o_ref[...] = y.astype(o_ref.dtype)


def net_forward(x, params, bounds_np, *, max_tile_b=4096):
    """Forward pass of Net as a single Pallas kernel.

    x:         (B, d_in) float32
    params:    dict with PyTorch-layout weights/biases:
               w1 (h1, d_in), b1 (h1,), w2 (h2, h1), b2 (h2,),
               w3 (d_out, h2), b3 (d_out,)   (all float32)
    bounds_np: numpy array (d_out, 2)
    """
    B, d_in = x.shape
    h1 = params["w1"].shape[0]
    h2 = params["w2"].shape[0]
    d_out = params["w3"].shape[0]

    # Static init-time flag, mirroring torch.isinf(self.bounds).sum().
    has_inf = bool(np.isinf(bounds_np).sum())
    bnd = jnp.asarray(np.asarray(bounds_np, dtype=np.float32).reshape(d_out, 2))

    # bf16 MXU operands for the weights; biases stay f32 (added to f32 accum).
    w1 = params["w1"].astype(jnp.bfloat16)
    w2 = params["w2"].astype(jnp.bfloat16)
    w3 = params["w3"].astype(jnp.bfloat16)
    bvec = jnp.concatenate([
        params["b1"].reshape(-1), params["b2"].reshape(-1),
        params["b3"].reshape(-1)]).reshape(-1, 1).astype(jnp.float32)

    # Tile selection: single block for tiny batches; otherwise at least 2 grid
    # steps (v7x megacore), lane-dense multiples of 128, capped at max_tile_b.
    if B <= 128:
        tile_b = B
    else:
        tile_b = min(_round_up(pl.cdiv(B, 2), 128), max_tile_b)
    grid_b = pl.cdiv(B, tile_b)

    kernel = functools.partial(_net_kernel, h1=h1, h2=h2, d_out=d_out,
                               has_inf=has_inf)

    flops = 2 * B * (d_in * h1 + h1 * h2 + h2 * d_out)
    transcendentals = 0 if has_inf else B * d_out
    bytes_accessed = int(B * d_in * 4 + B * d_out * 4
                         + 2 * (w1.size + w2.size + w3.size)
                         + 4 * (bvec.size + bnd.size))

    def param_spec(shape):
        return pl.BlockSpec(shape, lambda i: (0, 0))

    grid_spec = pltpu.PrefetchScalarGridSpec(
        num_scalar_prefetch=0,
        grid=(grid_b,),
        in_specs=[
            pl.BlockSpec((tile_b, d_in), lambda i: (i, 0)),   # x tile (batch-major)
            param_spec((h1, d_in)),                           # w1
            param_spec((h2, h1)),                             # w2
            param_spec((d_out, h2)),                          # w3
            param_spec((h1 + h2 + d_out, 1)),                 # packed biases
            param_spec((d_out, 2)),                           # bounds lo/hi
        ],
        out_specs=pl.BlockSpec((d_out, tile_b), lambda i: (0, i)),
    )

    out_fm = pl.pallas_call(
        kernel,
        out_shape=jax.ShapeDtypeStruct((d_out, B), jnp.float32),
        grid_spec=grid_spec,
        compiler_params=pltpu.CompilerParams(
            dimension_semantics=("parallel",)),
        cost_estimate=pl.CostEstimate(flops=flops,
                                      transcendentals=transcendentals,
                                      bytes_accessed=bytes_accessed),
    )(x.astype(jnp.float32), w1, w2, w3, bvec, bnd)

    # Feature-major (d_out, B) -> PyTorch-compatible (B, d_out).
    return out_fm.T


def _reference_forward(x, params, bounds_np):
    """Pure-JAX f32 reference for validation (PyTorch weight layout)."""
    h = jnp.maximum(x @ params["w1"].T + params["b1"], 0.0)
    h = jnp.maximum(h @ params["w2"].T + params["b2"], 0.0)
    y = h @ params["w3"].T + params["b3"]
    lo = jnp.asarray(bounds_np[:, 0], jnp.float32)
    hi = jnp.asarray(bounds_np[:, 1], jnp.float32)
    if np.isinf(bounds_np).sum():
        return jnp.minimum(jnp.maximum(y, lo), hi)
    return jax.nn.sigmoid(y) * (hi - lo) + lo


def _init_params(key, dimns):
    """Deterministic Kaiming-uniform-like init matching nn.Linear shapes."""
    params = {}
    ks = jax.random.split(key, 2 * (len(dimns) - 1))
    for i in range(len(dimns) - 1):
        fan_in, fan_out = dimns[i], dimns[i + 1]
        bound = 1.0 / np.sqrt(fan_in)
        params[f"w{i + 1}"] = jax.random.uniform(
            ks[2 * i], (fan_out, fan_in), minval=-bound, maxval=bound,
            dtype=jnp.float32)
        params[f"b{i + 1}"] = jax.random.uniform(
            ks[2 * i + 1], (fan_out,), minval=-bound, maxval=bound,
            dtype=jnp.float32)
    return params


if __name__ == "__main__":
    # Small MLP consistent with the module: dimns = [16, 32, 32, 8]
    dimns = [16, 32, 32, 8]

    key = jax.random.PRNGKey(0)
    kx, kp, kx2 = jax.random.split(key, 3)
    params = _init_params(kp, dimns)

    # Relaxed tolerances: MXU operands are bf16 (vs the f32 reference).
    RTOL, ATOL = 2e-2, 2e-2

    bounds_sig = np.stack([np.full(dimns[-1], -1.0),
                           np.full(dimns[-1], 2.0)], axis=1).astype(np.float64)
    bounds_inf = np.stack([np.full(dimns[-1], 0.0),
                           np.full(dimns[-1], np.inf)], axis=1).astype(np.float64)

    # Finite bounds -> sigmoid-rescaling branch (has_inf == 0), single block.
    x = jax.random.normal(kx, (16, dimns[0]), dtype=jnp.float32)
    out = jax.block_until_ready(net_forward(x, params, bounds_sig))
    np.testing.assert_allclose(np.asarray(out),
                               np.asarray(_reference_forward(x, params, bounds_sig)),
                               rtol=RTOL, atol=ATOL)

    # Infinite bounds -> clamp branch (has_inf == 1).
    out_inf = jax.block_until_ready(net_forward(x, params, bounds_inf))
    np.testing.assert_allclose(np.asarray(out_inf),
                               np.asarray(_reference_forward(x, params, bounds_inf)),
                               rtol=RTOL, atol=ATOL)

    # Ragged tiny batch (B=13, single ragged block).
    x13 = jax.random.normal(jax.random.PRNGKey(1), (13, dimns[0]),
                            dtype=jnp.float32)
    out13 = jax.block_until_ready(net_forward(x13, params, bounds_sig))
    np.testing.assert_allclose(np.asarray(out13),
                               np.asarray(_reference_forward(x13, params, bounds_sig)),
                               rtol=RTOL, atol=ATOL)

    # Larger ragged batch (B=300 -> tile_b=256, 2 grid steps, ragged last block).
    x300 = jax.random.normal(kx2, (300, dimns[0]), dtype=jnp.float32)
    out300 = jax.block_until_ready(net_forward(x300, params, bounds_sig))
    np.testing.assert_allclose(np.asarray(out300),
                               np.asarray(_reference_forward(x300, params, bounds_sig)),
                               rtol=RTOL, atol=ATOL)

    print("KERNEL_OK")
</pallas_src>

<mosaic_0001>
module attributes {stable_mosaic.version = 11 : i64} {
  func.func @_net_kernel(%arg0: i32, %arg1: memref<16x16xf32, #tpu.memory_space<vmem>>, %arg2: memref<32x16xbf16, #tpu.memory_space<vmem>>, %arg3: memref<32x32xbf16, #tpu.memory_space<vmem>>, %arg4: memref<8x32xbf16, #tpu.memory_space<vmem>>, %arg5: memref<72x1xf32, #tpu.memory_space<vmem>>, %arg6: memref<8x2xf32, #tpu.memory_space<vmem>>, %arg7: memref<8x16xf32, #tpu.memory_space<vmem>>) attributes {dimension_semantics = [#tpu.dimension_semantics<parallel>], iteration_bounds = array<i64: 1>, scalar_prefetch = 0 : i64, scratch_operands = 0 : i64, tpu.core_type = #tpu.core_type<tc>, window_params = [{transform_indices = @transform_0, window_bounds = array<i64: 16, 16>}, {pipeline_mode = #tpu.pipeline_mode<synchronous>, transform_indices = @transform_1, window_bounds = array<i64: 32, 16>}, {pipeline_mode = #tpu.pipeline_mode<synchronous>, transform_indices = @transform_2, window_bounds = array<i64: 32, 32>}, {pipeline_mode = #tpu.pipeline_mode<synchronous>, transform_indices = @transform_3, window_bounds = array<i64: 8, 32>}, {pipeline_mode = #tpu.pipeline_mode<synchronous>, transform_indices = @transform_4, window_bounds = array<i64: 72, 1>}, {pipeline_mode = #tpu.pipeline_mode<synchronous>, transform_indices = @transform_5, window_bounds = array<i64: 8, 2>}, {transform_indices = @transform_6, window_bounds = array<i64: 8, 16>}]} {
    %c0 = arith.constant 0 : index
    %c0_0 = arith.constant 0 : index
    %0 = vector.load %arg1[%c0, %c0_0] : memref<16x16xf32, #tpu.memory_space<vmem>>, vector<16x16xf32>
    %1 = arith.truncf %0 : vector<16x16xf32> to vector<16x16xbf16>
    %c0_1 = arith.constant 0 : index
    %c0_2 = arith.constant 0 : index
    %2 = vector.load %arg2[%c0_1, %c0_2] : memref<32x16xbf16, #tpu.memory_space<vmem>>, vector<32x16xbf16>
    %cst = arith.constant dense<0.000000e+00> : vector<32x16xf32>
    %3 = tpu.matmul %2, %1, %cst {dimension_numbers = #tpu.dot_dimension_numbers<[1], [1], [0], [0], [0, 0, 1, 0], [], []>} : vector<32x16xbf16>, vector<16x16xbf16>, vector<32x16xf32> -> vector<32x16xf32>
    %c0_3 = arith.constant 0 : index
    %c0_4 = arith.constant 0 : index
    %4 = vector.load %arg5[%c0_3, %c0_4] : memref<72x1xf32, #tpu.memory_space<vmem>>, vector<32x1xf32>
    %5 = vector.broadcast %4 : vector<32x1xf32> to vector<32x16xf32>
    %6 = arith.addf %3, %5 : vector<32x16xf32>
    %cst_5 = arith.constant 0.000000e+00 : f32
    %7 = vector.broadcast %cst_5 : f32 to vector<32x16xf32>
    %8 = arith.maximumf %6, %7 : vector<32x16xf32>
    %c0_6 = arith.constant 0 : index
    %c0_7 = arith.constant 0 : index
    %9 = vector.load %arg3[%c0_6, %c0_7] : memref<32x32xbf16, #tpu.memory_space<vmem>>, vector<32x32xbf16>
    %10 = arith.truncf %8 : vector<32x16xf32> to vector<32x16xbf16>
    %cst_8 = arith.constant dense<0.000000e+00> : vector<32x16xf32>
    %11 = tpu.matmul %9, %10, %cst_8 {dimension_numbers = #tpu.dot_dimension_numbers<[1], [0], [0], [1], [0, 0, 1, 1], [], []>} : vector<32x32xbf16>, vector<32x16xbf16>, vector<32x16xf32> -> vector<32x16xf32>
    %c32 = arith.constant 32 : index
    %c0_9 = arith.constant 0 : index
    %12 = vector.load %arg5[%c32, %c0_9] : memref<72x1xf32, #tpu.memory_space<vmem>>, vector<32x1xf32>
    %13 = vector.broadcast %12 : vector<32x1xf32> to vector<32x16xf32>
    %14 = arith.addf %11, %13 : vector<32x16xf32>
    %cst_10 = arith.constant 0.000000e+00 : f32
    %15 = vector.broadcast %cst_10 : f32 to vector<32x16xf32>
    %16 = arith.maximumf %14, %15 : vector<32x16xf32>
    %c0_11 = arith.constant 0 : index
    %c0_12 = arith.constant 0 : index
    %17 = vector.load %arg4[%c0_11, %c0_12] : memref<8x32xbf16, #tpu.memory_space<vmem>>, vector<8x32xbf16>
    %18 = arith.truncf %16 : vector<32x16xf32> to vector<32x16xbf16>
    %cst_13 = arith.constant dense<0.000000e+00> : vector<8x16xf32>
    %19 = tpu.matmul %17, %18, %cst_13 {dimension_numbers = #tpu.dot_dimension_numbers<[1], [0], [0], [1], [0, 0, 1, 1], [], []>} : vector<8x32xbf16>, vector<32x16xbf16>, vector<8x16xf32> -> vector<8x16xf32>
    %c64 = arith.constant 64 : index
    %c0_14 = arith.constant 0 : index
    %20 = vector.load %arg5[%c64, %c0_14] : memref<72x1xf32, #tpu.memory_space<vmem>>, vector<8x1xf32>
    %21 = vector.broadcast %20 : vector<8x1xf32> to vector<8x16xf32>
    %22 = arith.addf %19, %21 : vector<8x16xf32>
    %c0_15 = arith.constant 0 : index
    %c0_16 = arith.constant 0 : index
    %23 = vector.load %arg6[%c0_15, %c0_16] : memref<8x2xf32, #tpu.memory_space<vmem>>, vector<8x2xf32>
    %24 = vector.extract_strided_slice %23 {offsets = [0, 0], sizes = [8, 1], strides = [1, 1]} : vector<8x2xf32> to vector<8x1xf32>
    %25 = vector.extract_strided_slice %23 {offsets = [0, 1], sizes = [8, 1], strides = [1, 1]} : vector<8x2xf32> to vector<8x1xf32>
    %26 = arith.subf %25, %24 : vector<8x1xf32>
    %cst_17 = arith.constant 0.000000e+00 : f32
    %27 = vector.broadcast %cst_17 : f32 to vector<8x16xf32>
    %28 = arith.subf %27, %22 : vector<8x16xf32>
    %29 = math.exp %28 : vector<8x16xf32>
    %cst_18 = arith.constant 1.000000e+00 : f32
    %30 = vector.broadcast %cst_18 : f32 to vector<8x16xf32>
    %31 = arith.addf %30, %29 : vector<8x16xf32>
    %32 = tpu.reciprocal %31 {approx = true} : vector<8x16xf32> -> vector<8x16xf32>
    %33 = vector.broadcast %26 : vector<8x1xf32> to vector<8x16xf32>
    %34 = arith.mulf %33, %32 : vector<8x16xf32>
    %35 = vector.broadcast %24 : vector<8x1xf32> to vector<8x16xf32>
    %36 = arith.addf %34, %35 : vector<8x16xf32>
    %c0_19 = arith.constant 0 : index
    %c0_20 = arith.constant 0 : index
    %37 = vector.load %arg7[%c0_19, %c0_20] : memref<8x16xf32, #tpu.memory_space<vmem>>, vector<8x16xf32>
    tpu.vector_store %arg7[%c0_19, %c0_20], %36 {strides = array<i32>} : memref<8x16xf32, #tpu.memory_space<vmem>>, vector<8x16xf32>,
    return
  }
  func.func @transform_0(%arg0: i32) -> (i32, i32) {
    %c0_i32 = arith.constant 0 : i32
    %c0_i32_0 = arith.constant 0 : i32
    return %arg0, %c0_i32 : i32, i32
  }
  func.func @transform_1(%arg0: i32) -> (i32, i32) {
    %c0_i32 = arith.constant 0 : i32
    %c0_i32_0 = arith.constant 0 : i32
    %c0_i32_1 = arith.constant 0 : i32
    return %c0_i32, %c0_i32_0 : i32, i32
  }
  func.func @transform_2(%arg0: i32) -> (i32, i32) {
    %c0_i32 = arith.constant 0 : i32
    %c0_i32_0 = arith.constant 0 : i32
    %c0_i32_1 = arith.constant 0 : i32
    return %c0_i32, %c0_i32_0 : i32, i32
  }
  func.func @transform_3(%arg0: i32) -> (i32, i32) {
    %c0_i32 = arith.constant 0 : i32
    %c0_i32_0 = arith.constant 0 : i32
    %c0_i32_1 = arith.constant 0 : i32
    return %c0_i32, %c0_i32_0 : i32, i32
  }
  func.func @transform_4(%arg0: i32) -> (i32, i32) {
    %c0_i32 = arith.constant 0 : i32
    %c0_i32_0 = arith.constant 0 : i32
    %c0_i32_1 = arith.constant 0 : i32
    return %c0_i32, %c0_i32_0 : i32, i32
  }
  func.func @transform_5(%arg0: i32) -> (i32, i32) {
    %c0_i32 = arith.constant 0 : i32
    %c0_i32_0 = arith.constant 0 : i32
    %c0_i32_1 = arith.constant 0 : i32
    return %c0_i32, %c0_i32_0 : i32, i32
  }
  func.func @transform_6(%arg0: i32) -> (i32, i32) {
    %c0_i32 = arith.constant 0 : i32
    %c0_i32_0 = arith.constant 0 : i32
    return %c0_i32, %arg0 : i32, i32
  }
}

</mosaic_0001>

<bundles_post_ra>
// kernel: tpu_custom_call.1
= control target key start
LH: loop header
LB: loop body
LE: loop exit
PB: predicated region body
PF: predicated region fallthrough
CT: control target
= control target key end

     0   :  { %vm66_vm0 = vcmask 130048   ;;  %v297_v3 = vmov 0   ;;  %s397_s0 = inlined_call_operand.vmem [shape: f32[16,16], index: 0, kind: input, shape index: {}]   ;;  %s398_s1 = inlined_call_operand.vmem [shape: bf16[32,16], index: 1, kind: input, shape index: {}]   ;;  %s399_s2 = inlined_call_operand.vmem [shape: bf16[32,32], index: 2, kind: input, shape index: {}]   ;;  %s400_s3 = inlined_call_operand.vmem [shape: bf16[8,32], index: 3, kind: input, shape index: {}]   ;;  %s401_s4 = inlined_call_operand.vmem [shape: f32[72,1], index: 4, kind: input, shape index: {}]   ;;  %s402_s5 = inlined_call_operand.vmem [shape: f32[8,2], index: 5, kind: input, shape index: {}]   ;;  %s403_s6 = inlined_call_operand.hbm [shape: f32[8,16], index: 6, kind: output, shape index: {}]  }
   0x1   :  { %v34_v0 = vld [vmem:[%s401_s4 + $0x10] sm:$0xff]  ;;  %v25_v1 = vld [vmem:[%s397_s0] sm:$0xff]  ;;  %v26_v2 = vld [vmem:[%s397_s0 + $0x8] sm:$0xff]  ;;  %263 = vset.pattern.permute.xlu0 %v297_v3  ;;  %264 = vset.pattern.permute.xlu1 %v297_v3 }
   0x2   :  { %v27_v4 = vpack.c.bf16 %v26_v2, %v25_v1  ;;  %48 = vperm.xlu0 %263, %v34_v0   ;;  %v32_v5 = vld [vmem:[%s401_s4] sm:$0xff]  ;;  %265 = vset.pattern.permute.xlu2 %v297_v3 }
   0x3   :  { %38 = vperm.xlu1 %264, %v32_v5  }
   0x4   :  { %v74_v6 = vsel %vm66_vm0, %v27_v4, 0 }
   0x5   :  { %11 = vsyncpa [#allocation3], 0  ;;  %258 = vmatpush.bf16.xpose.msra.mxu3 %v74_v6  ;;  %83 = vmatpush.bf16.xpose.msra.mxu0 %v74_v6  ;;  %v255_v7 = vld [vmem:[%s398_s1 + $0x8] sm:$0xff]  ;;  %v35_v8 = vld [vmem:[%s401_s4 + $0x18] sm:$0xff]  ;;  %vm139_vm1 = vcmask 261120   ;;  %s298_s25 = smov 1  }
   0x6   :  { %v254_v9 = vld [vmem:[%s398_s1] sm:$0xff]  ;;  %v33_v10 = vld [vmem:[%s401_s4 + $0x8] sm:$0xff]  ;;  %v107_v19 = vld [vmem:[%s401_s4 + $0x30] sm:$0xff]  ;;  %v299_v42 = vmov 1   ;;  %s300_s27 = smov [#allocation2]  }
   0x7   :  { %v105_v11 = vld [vmem:[%s401_s4 + $0x20] sm:$0xff]  ;;  %v106_v12 = vld [vmem:[%s401_s4 + $0x28] sm:$0xff]  ;;  %121 = vperm.xlu2 %265, %v107_v19   ;;  %v108_v29 = vld [vmem:[%s401_s4 + $0x38] sm:$0xff]  ;;  %s222_s28 = sshll.u32 %s300_s27, 4  ;;  %s223_s28 = int_to_ptr.vmem [resolvable:$true] %s222_s28 }
   0x8   :  { %v172_v13 = vld [vmem:[%s401_s4 + $0x40] sm:$0xff]  ;;  %v257_v36 = vld [vmem:[%s399_s2 + $0x8] sm:$0xff] }
   0x9   :  { %v256_v34 = vld [vmem:[%s399_s2] sm:$0xff] }
   0xa   :  { %53 = vperm.xlu0 %263, %v35_v8   ;;  %v194_v35 = vld [vmem:[%s402_s5] sm:$0xff] }
   0xb   :  { %43 = vperm.xlu1 %264, %v33_v10   ;;  %v169_v58 = vld [vmem:[%s400_s3] sm:$0xf]  ;;  %s224_s3 = sshll.u32 %s403_s6, 4  ;;  %s225_s3 = int_to_ptr.hbm [resolvable:$true] %s224_s3 }
   0xc   :  { %242 = vmatmul.msk.bf16.vlgmr.msra.gmra.mxu3 %vm66_vm0, %v255_v7  ;;  %241 = vmatmul.msk.bf16.vlgmr.msra.gmra.mxu0 %vm66_vm0, %v254_v9 }
   0xf   :  { %126 = vperm.xlu2 %265, %v108_v29  }
  0x12   :  { %111 = vperm.xlu0 %263, %v105_v11  }
  0x13   :  { %116 = vperm.xlu1 %264, %v106_v12  }
  0x17   :  { %196 = vrot.lane.b32.xlu2 %v194_v35, %s298_s25 }
  0x1a   :  { %175 = vperm.xlu0 %263, %v172_v13  }
  0x1b   :  { %266 = vset.pattern.permute.xlu1 %v299_v42 }
  0x1f   :  { %212 = vperm.xlu2 %265, %v194_v35  }
  0x61   :  { %v122_v37 = vpop.permute.xlu2 %121 }
  0x69   :  { %v127_v38 = vpop.permute.xlu2 %126 }
  0x71   :  { %v197_v40 = vpop.permute.xlu2 %196 }
  0x72   :  { %v199_v41 = vsub.f32 %v194_v35, %v197_v40 }
  0x74   :  { %v49_v15 = vpop.permute.xlu0 %48  ;;  %207 = vperm.xlu1 %266, %v199_v41  }
  0x75   :  { %v39_v16 = vpop.permute.xlu1 %38 }
  0x79   :  { %v213_v6 = vpop.permute.xlu2 %212 }
  0x7c   :  { %v54_v20 = vpop.permute.xlu0 %53 }
  0x7d   :  { %v44_v22 = vpop.permute.xlu1 %43 }
  0x84   :  { %v112_v50 = vpop.permute.xlu0 %111 }
  0x85   :  { %v117_v46 = vpop.permute.xlu1 %116 }
  0x89   :  { %v85_v14 = vpop.f32.mrf.mxu0 }
  0x8a   :  { %v86_v24 = vadd.f32 %v85_v14, %v39_v16 }
  0x8c   :  { %v95_v30 = vmax.f32 %v86_v24, 0.0  ;;  %v176_v59 = vpop.permute.xlu0 %175 }
  0x8f   :  { %v90_v17 = vpop.f32.mrf.mxu3 }
  0x90   :  { %v91_v21 = vadd.f32 %v90_v17, %v49_v15 }
  0x91   :  { %v87_v18 = vpop.f32.mrf.mxu0 }
  0x92   :  { %v88_v25 = vadd.f32 %v87_v18, %v44_v22  ;;  %v97_v27 = vmax.f32 %v91_v21, 0.0 }
  0x94   :  { %v96_v31 = vmax.f32 %v88_v25, 0.0 }
  0x96   :  { %v103_v33 = vpack.c.bf16 %v96_v31, %v95_v30 }
  0x97   :  { %v92_v23 = vpop.f32.mrf.mxu3 }
  0x98   :  { %v93_v26 = vadd.f32 %v92_v23, %v54_v20 }
  0x9a   :  { %v98_v28 = vmax.f32 %v93_v26, 0.0 }
  0x9c   :  { %v104_v32 = vpack.c.bf16 %v98_v28, %v97_v27 }
  0x9e   :  { %152 = vmatpush.bf16.msra.mxu1 %v104_v32 }
  0xa2   :  { %153 = vmatpush.bf16.msra.mxu1 %v103_v33 }
  0xa5   :  { %251 = vmatmul.msk.bf16.vlgmr.msra.gmra.mxu1 %vm139_vm1, %v256_v34 }
  0xb5   :  { %252 = vmatmul.msk.bf16.gmra.mxu1 %vm139_vm1, %v257_v36 }
  0xe6   :  { %v208_v3 = vpop.permute.xlu1 %207 }
 0x122   :  { %v155_v39 = vpop.f32.mrf.mxu1 }
 0x123   :  { %v156_v51 = vadd.f32 %v155_v39, %v112_v50 }
 0x125   :  { %v165_v56 = vmax.f32 %v156_v51, 0.0 }
 0x12a   :  { %v157_v43 = vpop.f32.mrf.mxu1 }
 0x12b   :  { %v158_v48 = vadd.f32 %v157_v43, %v117_v46 }
 0x12d   :  { %v166_v54 = vmax.f32 %v158_v48, 0.0 }
 0x12f   :  { %v170_v57 = vpack.c.bf16 %v166_v54, %v165_v56 }
 0x132   :  { %v160_v44 = vpop.f32.mrf.mxu1 }
 0x133   :  { %v161_v45 = vadd.f32 %v160_v44, %v122_v37 }
 0x135   :  { %v167_v52 = vmax.f32 %v161_v45, 0.0 }
 0x13a   :  { %v162_v47 = vpop.f32.mrf.mxu1 }
 0x13b   :  { %v163_v49 = vadd.f32 %v162_v47, %v127_v38 }
 0x13d   :  { %v168_v53 = vmax.f32 %v163_v49, 0.0 }
 0x13f   :  { %v171_v55 = vpack.c.bf16 %v168_v53, %v167_v52 }
 0x141   :  { %187 = vmatpush.bf16.msra.mxu2 %v171_v55 }
 0x145   :  { %188 = vmatpush.bf16.msra.mxu2 %v170_v57 }
 0x148   :  { %253 = vmatmul.msk.bf16.vlgmr.msra.gmra.mxu2 %vm139_vm1, %v169_v58 }
 0x1cb   :  { %v190_v60 = vpop.f32.mrf.mxu2 }
 0x1cc   :  { %v191_v61 = vadd.f32 %v190_v60, %v176_v59 }
 0x1ce   :  { %v200_v62 = vsub.f32 0.0, %v191_v61 }
 0x1d0   :  { %v201_v63 = vmul.f32 1.442695, %v200_v62 }
 0x1d2   :  { %267 = vpow2.f32 %v201_v63 }
 0x1d3   :  { %v192_v0 = vpop.f32.mrf.mxu2 }
 0x1d8   :  { %v268_v1 = vpop.eup %267 }
 0x1d9   :  { %v203_v2 = vadd.f32 1.0, %v268_v1 }
 0x1db   :  { %269 = vrcp.f32 %v203_v2 }
 0x1e1   :  { %v270_v4 = vpop.eup %269 }
 0x1e2   :  { %v210_v5 = vmul.f32 %v270_v4, %v208_v3 }
 0x1e4   :  { %v215_v7 = vadd.f32 %v213_v6, %v210_v5 }
 0x1e6   :  { %216 = vst.msk [vmem:[#allocation2] sm:$0xff] %vm66_vm0, %v215_v7 }
 0x1e7   :  { %227 = dma.vmem_to_hbm [thread:$0]  %s223_s28, 128, %s225_s3, [#allocation3]  }
 0x1e8   :  { %295 = dma.done.wait [#allocation3], 128  }
 0x1e9   :  { %296 = vsyncadd [#allocation3], 4294967168 }
 0x1ea   :  { %232 = vsyncpa [#allocation3], 1 }

</bundles_post_ra>
